<compile_context>
chip_gen: v7x
topology: tpu7x:2x2x1
jax: 0.10.0
libtpu: 0.0.40
codegen_flags: <defaults>
</compile_context>

<pallas_src>
import functools

import jax
import jax.numpy as jnp
from jax.experimental import pallas as pl
from jax.experimental.pallas import tpu as pltpu


def _softplus(x):
    # Stable softplus: max(x, 0) + log1p(exp(-|x|)); finite for all finite x.
    return jnp.maximum(x, 0.0) + jnp.log1p(jnp.exp(-jnp.abs(x)))


def _disc_loss_kernel(dg_ref, dd_ref, o_ref, acc_ref, *,
                      n_valid, block_rows, cols, need_mask):
    # Zero the VMEM vector accumulator on the first grid step.
    @pl.when(pl.program_id(0) == 0)
    def _():
        acc_ref[...] = jnp.zeros_like(acc_ref)

    dg = dg_ref[...].astype(jnp.float32)
    dd = dd_ref[...].astype(jnp.float32)

    # loss per element: -log(sigmoid(dd))/2 - log(1 - sigmoid(dg))/2
    #                 = 0.5 * (softplus(-dd) + softplus(dg))
    per_elem = 0.5 * (_softplus(-dd) + _softplus(dg))

    if need_mask:
        # Mask out the zero-padded tail (flat element index >= n_valid).
        row_ids = jax.lax.broadcasted_iota(jnp.int32, (block_rows, cols), 0)
        col_ids = jax.lax.broadcasted_iota(jnp.int32, (block_rows, cols), 1)
        flat_idx = (pl.program_id(0) * block_rows + row_ids) * cols + col_ids
        per_elem = jnp.where(flat_idx < n_valid, per_elem, 0.0)

    # Element-wise (VPU) accumulate; no per-step XLU reduce or SMEM RMW.
    acc_ref[...] += per_elem

    # Single cross-lane/sublane reduction + scalar store on the last step.
    @pl.when(pl.program_id(0) == pl.num_programs(0) - 1)
    def _():
        o_ref[0, 0] = jnp.sum(acc_ref[...])


@functools.partial(jax.jit, static_argnames=("block_rows", "cols"))
def discriminator_loss(d_generated, d_data, *, block_rows=1024, cols=512):
    """sum(-log(sigmoid(d_data))/2 - log(1 - sigmoid(d_generated))/2)."""
    assert d_generated.shape == d_data.shape
    assert cols % 128 == 0

    n_valid = d_generated.size
    dg = d_generated.reshape(-1)
    dd = d_data.reshape(-1)

    # Reshape to a wide lane-dense 2D slab; pad rows up to a multiple of the
    # block row count (multiple of 8 for f32 sublane tiling).
    rows = pl.cdiv(n_valid, cols)
    rows_min = ((rows + 7) // 8) * 8
    br = min(block_rows, rows_min)
    rows_pad = ((rows + br - 1) // br) * br
    total_pad = rows_pad * cols

    pad = total_pad - n_valid
    if pad:
        dg = jnp.pad(dg, (0, pad))
        dd = jnp.pad(dd, (0, pad))
    dg2 = dg.reshape(rows_pad, cols)
    dd2 = dd.reshape(rows_pad, cols)

    grid = (rows_pad // br,)

    # VMEM budget: 2 inputs x 2 pipeline buffers x block + f32 accumulator.
    in_bytes = br * cols * jnp.dtype(d_generated.dtype).itemsize
    acc_bytes = br * cols * 4
    vmem_bytes = 2 * 2 * in_bytes + acc_bytes + (8 << 20)

    kernel = functools.partial(
        _disc_loss_kernel,
        n_valid=n_valid,
        block_rows=br,
        cols=cols,
        need_mask=(pad > 0),
    )

    out = pl.pallas_call(
        kernel,
        out_shape=jax.ShapeDtypeStruct((1, 1), jnp.float32),
        grid_spec=pltpu.PrefetchScalarGridSpec(
            num_scalar_prefetch=0,
            grid=grid,
            in_specs=[
                pl.BlockSpec((br, cols), lambda i: (i, 0)),
                pl.BlockSpec((br, cols), lambda i: (i, 0)),
            ],
            out_specs=pl.BlockSpec(
                (1, 1), lambda i: (0, 0), memory_space=pltpu.SMEM
            ),
            scratch_shapes=[pltpu.VMEM((br, cols), jnp.float32)],
        ),
        compiler_params=pltpu.CompilerParams(
            dimension_semantics=("arbitrary",),  # sequential reduction axis
            vmem_limit_bytes=int(vmem_bytes),
        ),
    )(dg2, dd2)
    return out[0, 0]


def _reference(d_generated, d_data):
    # Same math as the PyTorch module (benign inputs keep it finite).
    sg = jax.nn.sigmoid(d_generated.astype(jnp.float32))
    sd = jax.nn.sigmoid(d_data.astype(jnp.float32))
    return jnp.sum(-jnp.log(sd) / 2.0 - jnp.log(1.0 - sg) / 2.0)


if __name__ == "__main__":
    key = jax.random.PRNGKey(0)
    k1, k2 = jax.random.split(key)
    # Small discriminator-output shapes: batch=16, features=128.
    d_generated = jax.random.normal(k1, (16, 128), dtype=jnp.float32)
    d_data = jax.random.normal(k2, (16, 128), dtype=jnp.float32)

    loss = discriminator_loss(d_generated, d_data)
    jax.block_until_ready(loss)

    ref = _reference(d_generated, d_data)
    assert jnp.allclose(loss, ref, rtol=1e-5, atol=1e-5), (loss, ref)
    print("KERNEL_OK")
</pallas_src>

<mosaic_0001>
module attributes {stable_mosaic.version = 11 : i64} {
  func.func @_disc_loss_kernel(%arg0: i32, %arg1: memref<8x512xf32, #tpu.memory_space<vmem>>, %arg2: memref<8x512xf32, #tpu.memory_space<vmem>>, %arg3: memref<1x1xf32, #tpu.memory_space<smem>>, %arg4: memref<8x512xf32, #tpu.memory_space<vmem>>) attributes {dimension_semantics = [#tpu.dimension_semantics<arbitrary>], iteration_bounds = array<i64: 1>, scalar_prefetch = 0 : i64, scratch_operands = 1 : i64, tpu.core_type = #tpu.core_type<tc>, window_params = [{transform_indices = @transform_0, window_bounds = array<i64: 8, 512>}, {transform_indices = @transform_1, window_bounds = array<i64: 8, 512>}, {transform_indices = @transform_2, window_bounds = array<i64: 1, 1>}]} {
    %c0_i32 = arith.constant 0 : i32
    %0 = arith.cmpi eq, %arg0, %c0_i32 : i32
    %1 = arith.extui %0 : i1 to i32
    %c0_i32_0 = arith.constant 0 : i32
    %2 = arith.cmpi ne, %1, %c0_i32_0 : i32
    scf.if %2 {
      %cst_16 = arith.constant 0.000000e+00 : f32
      %44 = vector.broadcast %cst_16 : f32 to vector<8x512xf32>
      %c0_17 = arith.constant 0 : index
      %c0_18 = arith.constant 0 : index
      %45 = vector.load %arg4[%c0_17, %c0_18] : memref<8x512xf32, #tpu.memory_space<vmem>>, vector<8x512xf32>
      tpu.vector_store %arg4[%c0_17, %c0_18], %44 {strides = array<i32>} : memref<8x512xf32, #tpu.memory_space<vmem>>, vector<8x512xf32>,
    } else {
    }
    %c0 = arith.constant 0 : index
    %c0_1 = arith.constant 0 : index
    %3 = vector.load %arg1[%c0, %c0_1] : memref<8x512xf32, #tpu.memory_space<vmem>>, vector<8x512xf32>
    %c0_2 = arith.constant 0 : index
    %c0_3 = arith.constant 0 : index
    %4 = vector.load %arg2[%c0_2, %c0_3] : memref<8x512xf32, #tpu.memory_space<vmem>>, vector<8x512xf32>
    %cst = arith.constant 0.000000e+00 : f32
    %5 = vector.broadcast %cst : f32 to vector<8x512xf32>
    %6 = arith.subf %5, %4 : vector<8x512xf32>
    %cst_4 = arith.constant 0.000000e+00 : f32
    %7 = vector.broadcast %cst_4 : f32 to vector<8x512xf32>
    %8 = arith.maximumf %6, %7 : vector<8x512xf32>
    %9 = math.absf %6 : vector<8x512xf32>
    %cst_5 = arith.constant 0.000000e+00 : f32
    %10 = vector.broadcast %cst_5 : f32 to vector<8x512xf32>
    %11 = arith.subf %10, %9 : vector<8x512xf32>
    %12 = math.exp %11 : vector<8x512xf32>
    %13 = math.log1p %12 : vector<8x512xf32>
    %14 = arith.addf %8, %13 : vector<8x512xf32>
    %cst_6 = arith.constant 0.000000e+00 : f32
    %15 = vector.broadcast %cst_6 : f32 to vector<8x512xf32>
    %16 = arith.maximumf %3, %15 : vector<8x512xf32>
    %17 = math.absf %3 : vector<8x512xf32>
    %cst_7 = arith.constant 0.000000e+00 : f32
    %18 = vector.broadcast %cst_7 : f32 to vector<8x512xf32>
    %19 = arith.subf %18, %17 : vector<8x512xf32>
    %20 = math.exp %19 : vector<8x512xf32>
    %21 = math.log1p %20 : vector<8x512xf32>
    %22 = arith.addf %16, %21 : vector<8x512xf32>
    %23 = arith.addf %14, %22 : vector<8x512xf32>
    %cst_8 = arith.constant 5.000000e-01 : f32
    %24 = vector.broadcast %cst_8 : f32 to vector<8x512xf32>
    %25 = arith.mulf %24, %23 : vector<8x512xf32>
    %26 = tpu.iota {dimensions = array<i32: 0>} : vector<8x512xi32>
    %27 = tpu.iota {dimensions = array<i32: 1>} : vector<8x512xi32>
    %c8_i32 = arith.constant 8 : i32
    %28 = arith.muli %arg0, %c8_i32 : i32
    %29 = vector.broadcast %28 : i32 to vector<8x512xi32>
    %30 = arith.addi %29, %26 : vector<8x512xi32>
    %c512_i32 = arith.constant 512 : i32
    %31 = vector.broadcast %c512_i32 : i32 to vector<8x512xi32>
    %32 = arith.muli %30, %31 : vector<8x512xi32>
    %33 = arith.addi %32, %27 : vector<8x512xi32>
    %c2048_i32 = arith.constant 2048 : i32
    %34 = vector.broadcast %c2048_i32 : i32 to vector<8x512xi32>
    %35 = arith.cmpi slt, %33, %34 : vector<8x512xi32>
    %cst_9 = arith.constant 0.000000e+00 : f32
    %36 = vector.broadcast %cst_9 : f32 to vector<8x512xf32>
    %37 = arith.select %35, %25, %36 : vector<8x512xi1>, vector<8x512xf32>
    %c0_10 = arith.constant 0 : index
    %c0_11 = arith.constant 0 : index
    %38 = vector.load %arg4[%c0_10, %c0_11] : memref<8x512xf32, #tpu.memory_space<vmem>>, vector<8x512xf32>
    %39 = arith.addf %38, %37 : vector<8x512xf32>
    %c0_12 = arith.constant 0 : index
    %c0_13 = arith.constant 0 : index
    %40 = vector.load %arg4[%c0_12, %c0_13] : memref<8x512xf32, #tpu.memory_space<vmem>>, vector<8x512xf32>
    tpu.vector_store %arg4[%c0_12, %c0_13], %39 {strides = array<i32>} : memref<8x512xf32, #tpu.memory_space<vmem>>, vector<8x512xf32>,
    %c0_i32_14 = arith.constant 0 : i32
    %41 = arith.cmpi eq, %arg0, %c0_i32_14 : i32
    %42 = arith.extui %41 : i1 to i32
    %c0_i32_15 = arith.constant 0 : i32
    %43 = arith.cmpi ne, %42, %c0_i32_15 : i32
    scf.if %43 {
      %c0_16 = arith.constant 0 : index
      %c0_17 = arith.constant 0 : index
      %44 = vector.load %arg4[%c0_16, %c0_17] : memref<8x512xf32, #tpu.memory_space<vmem>>, vector<8x512xf32>
      %45 = vector.shape_cast %44 : vector<8x512xf32> to vector<1x8x512xf32>
      %cst_18 = arith.constant dense<0.000000e+00> : vector<1xf32>
      %46 = vector.multi_reduction <add>, %45, %cst_18 [1, 2] : vector<1x8x512xf32> to vector<1xf32>
      %47 = vector.shape_cast %46 : vector<1xf32> to vector<1x1x1xf32>
      %48 = vector.extract %47[0, 0, 0] : f32 from vector<1x1x1xf32>
      %c0_19 = arith.constant 0 : index
      %c0_20 = arith.constant 0 : index
      %49 = memref.load %arg3[%c0_19, %c0_20] : memref<1x1xf32, #tpu.memory_space<smem>>
      memref.store %48, %arg3[%c0_19, %c0_20] : memref<1x1xf32, #tpu.memory_space<smem>>
    } else {
    }
    return
  }
  func.func @transform_0(%arg0: i32) -> (i32, i32) {
    %c0_i32 = arith.constant 0 : i32
    %c0_i32_0 = arith.constant 0 : i32
    return %arg0, %c0_i32 : i32, i32
  }
  func.func @transform_1(%arg0: i32) -> (i32, i32) {
    %c0_i32 = arith.constant 0 : i32
    %c0_i32_0 = arith.constant 0 : i32
    return %arg0, %c0_i32 : i32, i32
  }
  func.func @transform_2(%arg0: i32) -> (i32, i32) {
    %c0_i32 = arith.constant 0 : i32
    %c0_i32_0 = arith.constant 0 : i32
    %c0_i32_1 = arith.constant 0 : i32
    return %c0_i32, %c0_i32_0 : i32, i32
  }
}

</mosaic_0001>

<bundles_post_ra>
// kernel: discriminator_loss.1
= control target key start
LH: loop header
LB: loop body
LE: loop exit
PB: predicated region body
PF: predicated region fallthrough
CT: control target
= control target key end

     0   :  { %s482_s0 = inlined_call_operand.vmem [shape: f32[8,512], index: 0, kind: input, shape index: {}]   ;;  %s483_s1 = inlined_call_operand.vmem [shape: f32[8,512], index: 1, kind: input, shape index: {}]   ;;  %s484_s2 = inlined_call_operand.hbm [shape: f32[1,1], index: 2, kind: output, shape index: {}]  }
   0x1   :  { %v295_v0 = vld [vmem:[%s482_s0] sm:$0xff]  ;;  %v300_v1 = vld [vmem:[%s482_s0 + $0x8] sm:$0xff]  ;;  %v315_v4 = vld [vmem:[%s483_s1 + $0x10] sm:$0xff] }
   0x2   :  { %v305_v2 = vld [vmem:[%s483_s1] sm:$0xff]  ;;  %v310_v3 = vld [vmem:[%s483_s1 + $0x8] sm:$0xff]  ;;  %v320_v5 = vld [vmem:[%s483_s1 + $0x18] sm:$0xff]  ;;  %v30_v10 = vsub.f32 0.0, %v315_v4  ;;  %v96_v12 = vand.u32 2147483647, %v295_v0 }
   0x3   :  { %v28_v6 = vsub.f32 0.0, %v305_v2  ;;  %v29_v7 = vsub.f32 0.0, %v310_v3  ;;  %v327_v8 = vld [vmem:[%s482_s0 + $0x10] sm:$0xff]  ;;  %v332_v9 = vld [vmem:[%s482_s0 + $0x18] sm:$0xff]  ;;  %v31_v11 = vsub.f32 0.0, %v320_v5 }
   0x4   :  { %v97_v15 = vand.u32 2147483647, %v300_v1  ;;  %v38_v16 = vand.u32 2147483647, %v30_v10  ;;  %v98_v20 = vand.u32 2147483647, %v327_v8 }
   0x5   :  { %v36_v13 = vand.u32 2147483647, %v28_v6  ;;  %v37_v14 = vand.u32 2147483647, %v29_v7  ;;  %v39_v17 = vand.u32 2147483647, %v31_v11 }
   0x6   :  { %v99_v21 = vand.u32 2147483647, %v332_v9  ;;  %v42_v22 = vsub.f32 0.0, %v38_v16  ;;  %v100_v24 = vsub.f32 0.0, %v96_v12 }
   0x7   :  { %v40_v18 = vsub.f32 0.0, %v36_v13  ;;  %v41_v19 = vsub.f32 0.0, %v37_v14  ;;  %v43_v23 = vsub.f32 0.0, %v39_v17 }
   0x8   :  { %7 = vsyncpa [#allocation4], 0  ;;  %v101_v27 = vsub.f32 0.0, %v97_v15  ;;  %v48_v28 = vmul.f32 1.442695, %v42_v22  ;;  %v102_v30 = vsub.f32 0.0, %v98_v20  ;;  %v160_v36 = vlaneseq }
   0x9   :  { %v44_v25 = vmul.f32 1.442695, %v40_v18  ;;  %v46_v26 = vmul.f32 1.442695, %v41_v19  ;;  %v50_v29 = vmul.f32 1.442695, %v43_v23 }
   0xa   :  { %v104_v31 = vmul.f32 1.442695, %v100_v24  ;;  %v103_v32 = vsub.f32 0.0, %v99_v21  ;;  %v106_v33 = vmul.f32 1.442695, %v101_v27  ;;  %v161_v42 = vshrl.u32 %v160_v36, 7 }
   0xb   :  { %232 = vpow2.f32 %v44_v25  ;;  %v108_v34 = vmul.f32 1.442695, %v102_v30  ;;  %v92_v45 = vmax.f32 %v295_v0, 0.0  ;;  %v93_v47 = vmax.f32 %v300_v1, 0.0  ;;  %s264_s26 = scalar_lea.hbm %s484_s2, 16 }
   0xc   :  { %234 = vpow2.f32 %v46_v26  ;;  %v110_v35 = vmul.f32 1.442695, %v103_v32  ;;  %v94_v48 = vmax.f32 %v327_v8, 0.0  ;;  %v163_v49 = vand.u32 127, %v160_v36  ;;  %p265_p0 = scmp.ne.s32.totalorder %s484_s2, %s264_s26  ;;  %p268_p1 = scmp.lt.u32.totalorder %s264_s26, %s484_s2 }
   0xd   :  { %236 = vpow2.f32 %v48_v28  ;;  %v95_v52 = vmax.f32 %v332_v9, 0.0  ;;  %v359_v54 = vmax.f32 %v28_v6, 0.0  ;;  %v361_v55 = vmax.f32 %v29_v7, 0.0 }
   0xe   :  { %238 = vpow2.f32 %v50_v29  ;;  %v363_v56 = vmax.f32 %v30_v10, 0.0  ;;  %v365_v57 = vmul.u32 512, %v161_v42  ;;  %v373_v62 = vmax.f32 %v31_v11, 0.0  ;;  %p270_p2 = pnand %p268_p1, %p265_p0 }
   0xf   :  { %240 = vpow2.f32 %v104_v31  ;;  %v164_v2 = vadd.s32 128, %v163_v49  ;;  %v376_v3 = vadd.s32 256, %v163_v49  ;;  %v384_v5 = vadd.s32 384, %v163_v49 }
  0x10   :  { %242 = vpow2.f32 %v106_v33  ;;  %v387_v11 = vadd.s32 %v365_v57, %v163_v49 }
  0x11   :  { %244 = vpow2.f32 %v108_v34  ;;  %v406_v33 = vadd.s32 %v365_v57, %v164_v2 }
  0x12   :  { %246 = vpow2.f32 %v110_v35  ;;  %vm175_vm8 = vcmp.lt.s32.totalorder %v387_v11, 2048 }
  0x13   :  { %vm176_vm9 = vcmp.lt.s32.totalorder %v406_v33, 2048 }
  0x15   :  { %v233_v37 = vpop.eup %232 }
  0x16   :  { %v342_v38 = vpop.eup %234  ;;  %v52_v39 = vadd.f32 1.0, %v233_v37  ;;  %v55_v50 = vmul.f32 -0.5, %v233_v37  ;;  %v58_v59 = vand.u32 2147483647, %v233_v37 }
  0x17   :  { %v344_v40 = vpop.eup %236  ;;  %v61_v41 = vadd.f32 1.0, %v342_v38  ;;  %v64_v60 = vmul.f32 -0.5, %v342_v38  ;;  %v67_v63 = vand.u32 2147483647, %v342_v38 }
  0x18   :  { %v347_v43 = vpop.eup %238  ;;  %248 = vlog2.f32 %v52_v39  ;;  %v70_v44 = vadd.f32 1.0, %v344_v40  ;;  %v56_v6 = vadd.f32 1.0, %v55_v50  ;;  %v73_v7 = vmul.f32 -0.5, %v344_v40 }
  0x19   :  { %v351_v46 = vpop.eup %240  ;;  %250 = vlog2.f32 %v61_v41  ;;  %v79_v51 = vadd.f32 1.0, %v347_v43  ;;  %vm389_vm0 = vcmp.lt.f32.partialorder %v58_v59, 0.0004427343  ;;  %v65_v15 = vadd.f32 1.0, %v64_v60 }
  0x1a   :  { %252 = vlog2.f32 %v70_v44  ;;  %v357_v53 = vpop.eup %242  ;;  %v112_v61 = vadd.f32 1.0, %v351_v46  ;;  %v115_v12 = vmul.f32 -0.5, %v351_v46  ;;  %v82_v16 = vmul.f32 -0.5, %v347_v43 }
  0x1b   :  { %v367_v58 = vpop.eup %244  ;;  %254 = vlog2.f32 %v79_v51  ;;  %v121_v10 = vadd.f32 1.0, %v357_v53  ;;  %v76_v17 = vand.u32 2147483647, %v344_v40  ;;  %v124_v18 = vmul.f32 -0.5, %v357_v53 }
  0x1c   :  { %v378_v4 = vpop.eup %246  ;;  %256 = vlog2.f32 %v112_v61  ;;  %v130_v13 = vadd.f32 1.0, %v367_v58  ;;  %v57_v21 = vmul.f32 %v233_v37, %v56_v6  ;;  %vm397_vm1 = vcmp.lt.f32.partialorder %v67_v63, 0.0004427343 }
  0x1d   :  { %258 = vlog2.f32 %v121_v10  ;;  %v139_v19 = vadd.f32 1.0, %v378_v4  ;;  %v74_v23 = vadd.f32 1.0, %v73_v7  ;;  %v133_v24 = vmul.f32 -0.5, %v367_v58 }
  0x1e   :  { %260 = vlog2.f32 %v130_v13  ;;  %v116_v27 = vadd.f32 1.0, %v115_v12  ;;  %v142_v28 = vmul.f32 -0.5, %v378_v4  ;;  %v83_v30 = vadd.f32 1.0, %v82_v16 }
  0x1f   :  { %262 = vlog2.f32 %v139_v19  ;;  %v85_v31 = vand.u32 2147483647, %v347_v43  ;;  %v118_v32 = vand.u32 2147483647, %v351_v46  ;;  %v66_v35 = vmul.f32 %v342_v38, %v65_v15 }
  0x20   :  { %vm409_vm2 = vcmp.lt.f32.partialorder %v76_v17, 0.0004427343  ;;  %v125_v37 = vadd.f32 1.0, %v124_v18  ;;  %v75_v42 = vmul.f32 %v344_v40, %v74_v23  ;;  %v127_v44 = vand.u32 2147483647, %v357_v53 }
  0x21   :  { %v134_v49 = vadd.f32 1.0, %v133_v24  ;;  %v117_v51 = vmul.f32 %v351_v46, %v116_v27  ;;  %v136_v59 = vand.u32 2147483647, %v367_v58  ;;  %v143_v38 = vadd.f32 1.0, %v142_v28 }
  0x22   :  { %v249_v20 = vpop.eup %248  ;;  %v84_v63 = vmul.f32 %v347_v43, %v83_v30  ;;  %vm420_vm3 = vcmp.lt.f32.partialorder %v85_v31, 0.0004427343  ;;  %vm424_vm4 = vcmp.lt.f32.partialorder %v118_v32, 0.0004427343  ;;  %v126_v46 = vmul.f32 %v357_v53, %v125_v37 }
  0x23   :  { %v251_v25 = vpop.eup %250  ;;  %v54_v26 = vmul.f32 0.6931472, %v249_v20  ;;  %v145_v10 = vand.u32 2147483647, %v378_v4  ;;  %vm435_vm5 = vcmp.lt.f32.partialorder %v127_v44, 0.0004427343  ;;  %v135_v15 = vmul.f32 %v367_v58, %v134_v49 }
  0x24   :  { %v253_v29 = vpop.eup %252  ;;  %v63_v34 = vmul.f32 0.6931472, %v251_v25  ;;  %vm442_vm6 = vcmp.lt.f32.partialorder %v136_v59, 0.0004427343  ;;  %v144_v19 = vmul.f32 %v378_v4, %v143_v38  ;;  %v173_v25 = vadd.s32 %v365_v57, %v376_v3 }
  0x25   :  { %v255_v39 = vpop.eup %254  ;;  %v72_v41 = vmul.f32 0.6931472, %v253_v29  ;;  %v60_v50 = vsel %vm389_vm0, %v57_v21, %v54_v26  ;;  %vm146_vm7 = vcmp.lt.f32.partialorder %v145_v10, 0.0004427343  ;;  %v174_v3 = vadd.s32 %v365_v57, %v384_v5 }
  0x26   :  { %v257_v60 = vpop.eup %256  ;;  %v81_v61 = vmul.f32 0.6931472, %v255_v39  ;;  %v69_v6 = vsel %vm397_vm1, %v66_v35, %v63_v34  ;;  %v88_v13 = vadd.f32 %v60_v50, %v359_v54  ;;  %vm177_vm10 = vcmp.lt.s32.totalorder %v173_v25, 2048 }
  0x27   :  { %v114_v7 = vmul.f32 0.6931472, %v257_v60  ;;  %v259_v12 = vpop.eup %258  ;;  %v78_v43 = vsel %vm409_vm2, %v75_v42, %v72_v41  ;;  %v89_v20 = vadd.f32 %v69_v6, %v361_v55  ;;  %vm178_vm11 = vcmp.lt.s32.totalorder %v174_v3, 2048 }
  0x28   :  { %v261_v16 = vpop.eup %260  ;;  %v123_v18 = vmul.f32 0.6931472, %v259_v12  ;;  %v87_v54 = vsel %vm420_vm3, %v84_v63, %v81_v61  ;;  %v90_v23 = vadd.f32 %v78_v43, %v363_v56 }
  0x29   :  { %v120_v17 = vsel %vm424_vm4, %v117_v51, %v114_v7  ;;  %v132_v21 = vmul.f32 0.6931472, %v261_v16  ;;  %v263_v22 = vpop.eup %262  ;;  %v91_v0 = vadd.f32 %v87_v54, %v373_v62 }
  0x2a   :  { %v148_v58 = vadd.f32 %v120_v17, %v92_v45  ;;  %v129_v24 = vsel %vm435_vm5, %v126_v46, %v123_v18  ;;  %v141_v26 = vmul.f32 0.6931472, %v263_v22 }
  0x2b   :  { %v138_v4 = vsel %vm442_vm6, %v135_v15, %v132_v21  ;;  %v149_v55 = vadd.f32 %v129_v24, %v93_v47 }
  0x2c   :  { %v152_v27 = vadd.f32 %v148_v58, %v88_v13  ;;  %v150_v45 = vadd.f32 %v138_v4, %v94_v48  ;;  %v147_v56 = vsel %vm146_vm7, %v144_v19, %v141_v26 }
  0x2d   :  { %v153_v28 = vadd.f32 %v149_v55, %v89_v20  ;;  %v151_v30 = vadd.f32 %v147_v56, %v95_v52 }
  0x2e   :  { %v156_v29 = vmul.f32 0.5, %v152_v27  ;;  %v154_v31 = vadd.f32 %v150_v45, %v90_v23 }
  0x2f   :  { %v157_v1 = vmul.f32 0.5, %v153_v28  ;;  %v155_v62 = vadd.f32 %v151_v30, %v91_v0 }
  0x30   :  { %v179_v47 = vsel %vm175_vm8, %v156_v29, 0.0  ;;  %v158_v8 = vmul.f32 0.5, %v154_v31 }
  0x31   :  { %v180_v48 = vsel %vm176_vm9, %v157_v1, 0.0  ;;  %v159_v11 = vmul.f32 0.5, %v155_v62 }
  0x32   :  { %v181_v32 = vsel %vm177_vm10, %v158_v8, 0.0  ;;  %v202_v34 = vadd.f32 %v180_v48, %v179_v47 }
  0x33   :  { %v182_v35 = vsel %vm178_vm11, %v159_v11, 0.0 }
  0x34   :  { %v203_v36 = vadd.f32 %v202_v34, %v181_v32 }
  0x36   :  { %v204_v37 = vadd.f32 %v203_v36, %v182_v35 }
  0x38   :  { %205 = vadd.xlane.f32.xlu0 %v204_v37 }
  0xc5   :  { %v206_v57 = vpop.xlane.xlu0 %205 }
  0xc6   :  { %v207_v9 = vrot.slane %v206_v57, 4 }
  0xc8   :  { %v208_v52 = vadd.f32 %v207_v9, %v206_v57 }
  0xca   :  { %v209_v5 = vrot.slane %v208_v52, 2 }
  0xcc   :  { %v210_v39 = vadd.f32 %v209_v5, %v208_v52 }
  0xce   :  { %v211_v33 = vrot.slane %v210_v39, 1 }
  0xd0   :  { %v212_v41 = vadd.f32 %v211_v33, %v210_v39 }
  0xd2   :  { %229 = vpush %v212_v41 }
 0x103   :  { %s230_s0 = spop %229 }
 0x104   :  { %215 = sst [smem:[#allocation3]] %s230_s0 }
 0x105   :  { %273 = shalt.err (!%p270_p2)
}
 0x106   :  { %s276_s3 = smov [#allocation3]  }
 0x107   :  { %223 = dma.smem_to_hbm %s276_s3, 16, %s484_s2, [#allocation4]  }
 0x108   :  { %274 = dma.done.wait [#allocation4], 16  }
 0x109   :  { %275 = vsyncadd [#allocation4], 4294967280 }
 0x10a   :  { %227 = sfence }
 0x10b   :  { %228 = vsyncpa [#allocation4], 1 }

</bundles_post_ra>
